<compile_context>
chip_gen: v6e
topology: v6e:2x2x1
jax: 0.10.0
libtpu: 0.0.40
codegen_flags: <defaults>
</compile_context>

<pallas_src>
import math
from functools import partial

import jax
import jax.numpy as jnp
from jax.experimental import pallas as pl
from jax.experimental.pallas import tpu as pltpu


def _round_up(x, m):
    return ((x + m - 1) // m) * m


# ----------------------------- Pallas kernel -----------------------------

def _init_edge_kernel(zij_ref, rbf_ref, b_fold_ref, w_lin_r_ref,
                      b_rbf0_ref, b_lin_ref, e1_ref, e2_ref,
                      *, hidden, npad, act_dtype):
    H = hidden
    TE = rbf_ref.shape[0]

    # ---- unpack per-edge atom types: packed = zi | (zj << 8) --------------
    packed = zij_ref[...]                              # (TE, 1) int32
    zi = packed & 0xFF
    zj = packed >> 8

    # ---- one-hot over the folded table -------------------------------------
    # columns [0, npad) select x[i]'s row, [npad, 2*npad) select x[j]'s row.
    # Exact in bf16; atom types < 95 < npad so ranges never collide.
    iota = jax.lax.broadcasted_iota(jnp.int32, (TE, 2 * npad), 1)
    oh = ((iota == zi) | (iota == (zj + npad))).astype(b_fold_ref.dtype)

    # ---- single fused K = 2*npad + R_pad MXU pass --------------------------
    #   y columns: [ x_i@W_i + x_j@W_j | rbf@w_rbf0 | rbf@w_rbf1 ]
    a = jnp.concatenate([oh, rbf_ref[...]], axis=1)    # (TE, K_TOT) bf16
    y = jnp.dot(a, b_fold_ref[...], preferred_element_type=jnp.float32)

    # swish(lin_rbf_0(rbf)):   (sigmoid in bf16, add/mul in f32)
    r0 = y[:, H:2 * H] + b_rbf0_ref[...]
    rbf0 = r0 * jax.nn.sigmoid(r0.astype(act_dtype)).astype(jnp.float32)

    # lin(cat([x_i, x_j, rbf0])) : the rbf0 part needs its own H x H dot
    h = y[:, :H] + b_lin_ref[...]
    h = h + jnp.dot(rbf0.astype(w_lin_r_ref.dtype), w_lin_r_ref[...],
                    preferred_element_type=jnp.float32)
    e1 = h * jax.nn.sigmoid(h.astype(act_dtype)).astype(jnp.float32)   # swish
    e2 = y[:, 2 * H:] * e1                                              # lin_rbf_1(rbf) * e1

    e1_ref[...] = e1.astype(e1_ref.dtype)
    e2_ref[...] = e2.astype(e2_ref.dtype)


# ------------------------------ wrapper ------------------------------------

def init_forward_pallas(x, i, j, rbf, params, *, edge_tile=None,
                        compute_dtype=jnp.bfloat16, out_dtype=None,
                        act_dtype=jnp.bfloat16):
    """Pallas-backed forward of the `init` module.

    x:   int32 [N]        atom types (0..94)
    i,j: int32 [E]        edge endpoint indices
    rbf: f32   [E, R]     radial basis features (first element of `emb` tuple)
    Returns (e1, e2), each [E, H] in `out_dtype` (bf16 by default).
    """
    emb_w = params["emb_weight"]          # [95, H]  f32
    w_rbf0 = params["w_rbf0"]             # [R, H]
    b_rbf0 = params["b_rbf0"]             # [H]
    w_lin = params["w_lin"]               # [3H, H]
    b_lin = params["b_lin"]               # [H]
    w_rbf1 = params["w_rbf1"]             # [R, H]

    H = emb_w.shape[1]
    E, R = rbf.shape
    if out_dtype is None:
        out_dtype = compute_dtype

    if E == 0:                                        # guard: empty edge set
        z = jnp.zeros((0, H), out_dtype)
        return z, z

    # ---- one-time weight folding into one [K_TOT, 3H] block matrix --------
    R_pad = _round_up(R, 8)
    NPAD = (256 - R_pad) // 2                         # 124 when R <= 8
    if NPAD < 95:                                     # very large num_radial
        NPAD = 128
    K_TOT = 2 * NPAD + R_pad

    t_i = emb_w @ w_lin[:H]                           # emb @ W_lin[x_i part]  [95, H]
    t_j = emb_w @ w_lin[H:2 * H]                      # emb @ W_lin[x_j part]  [95, H]
    b_fold = jnp.zeros((K_TOT, 3 * H), jnp.float32)
    b_fold = b_fold.at[0:95, 0:H].set(t_i)
    b_fold = b_fold.at[NPAD:NPAD + 95, 0:H].set(t_j)
    b_fold = b_fold.at[2 * NPAD:2 * NPAD + R, H:2 * H].set(w_rbf0)
    b_fold = b_fold.at[2 * NPAD:2 * NPAD + R, 2 * H:].set(w_rbf1)
    b_fold = b_fold.astype(compute_dtype)

    w_lin_r = w_lin[2 * H:].astype(compute_dtype)                    # [H, H]
    b_rbf0_2d = b_rbf0.reshape(1, H).astype(jnp.float32)
    b_lin_2d = b_lin.reshape(1, H).astype(jnp.float32)

    # Tiny int glue: atom type of each edge endpoint, packed into one int32.
    zi = jnp.take(x.astype(jnp.int32), i.astype(jnp.int32), axis=0)  # [E]
    zj = jnp.take(x.astype(jnp.int32), j.astype(jnp.int32), axis=0)  # [E]
    packed = (zi | (zj << 8)).astype(jnp.int32)                      # both < 95

    # ---- edge tiling / ragged-E padding (bf16-friendly multiples of 16) ---
    if edge_tile is None:
        edge_tile = 2048
    edge_tile = max(16, _round_up(int(edge_tile), 16))
    edge_tile = min(edge_tile, _round_up(E, 16))
    # keep >= 2 grid steps on non-tiny graphs (dual-TC sharding on v7x)
    if _round_up(E, edge_tile) // edge_tile == 1 and edge_tile >= 1024:
        edge_tile = _round_up(edge_tile // 2, 16)
    E_pad = _round_up(E, edge_tile)
    grid = (E_pad // edge_tile,)
    pad = E_pad - E

    packed_p = jnp.pad(packed, (0, pad)).reshape(E_pad, 1)
    rbf_p = jnp.zeros((E_pad, R_pad), compute_dtype).at[:E, :R].set(
        rbf.astype(compute_dtype))

    edge_out_spec = pl.BlockSpec((edge_tile, H), lambda e: (e, 0))
    full = lambda shape: pl.BlockSpec(shape, lambda e: (0, 0))

    kernel = partial(_init_edge_kernel, hidden=H, npad=NPAD, act_dtype=act_dtype)

    e1, e2 = pl.pallas_call(
        kernel,
        out_shape=(jax.ShapeDtypeStruct((E_pad, H), out_dtype),
                   jax.ShapeDtypeStruct((E_pad, H), out_dtype)),
        grid_spec=pltpu.PrefetchScalarGridSpec(
            num_scalar_prefetch=0,
            grid=grid,
            in_specs=[
                pl.BlockSpec((edge_tile, 1), lambda e: (e, 0)),     # packed x[i]|x[j]
                pl.BlockSpec((edge_tile, R_pad), lambda e: (e, 0)), # rbf tile
                full((K_TOT, 3 * H)),                               # folded block matrix
                full((H, H)),                                       # W_lin rbf0-part
                full((1, H)),                                       # b_rbf0
                full((1, H)),                                       # b_lin
            ],
            out_specs=[edge_out_spec, edge_out_spec],
        ),
        compiler_params=pltpu.CompilerParams(
            dimension_semantics=("parallel",),
            vmem_limit_bytes=32 * 1024 * 1024),
    )(packed_p, rbf_p, b_fold, w_lin_r, b_rbf0_2d, b_lin_2d)

    if pad:  # only pay the row-slice copy when E is ragged
        e1 = e1[:E]
        e2 = e2[:E]
    return e1, e2


# --------------------------- parameter creation ---------------------------

def make_params(key, num_radial, hidden_channels):
    """Deterministic synthetic parameters (mirrors shapes of the PyTorch module)."""
    k_emb, k_w0, k_b0, k_wl, k_bl, k_w1 = jax.random.split(key, 6)
    H, R = hidden_channels, num_radial
    s3 = math.sqrt(3.0)
    params = {
        # Embedding(95, H), uniform(-sqrt(3), sqrt(3))
        "emb_weight": jax.random.uniform(k_emb, (95, H), jnp.float32, -s3, s3),
        # lin_rbf_0: Linear(R, H) -> stored transposed as [R, H]
        "w_rbf0": jax.random.uniform(k_w0, (R, H), jnp.float32,
                                     -1.0 / math.sqrt(R), 1.0 / math.sqrt(R)),
        "b_rbf0": jax.random.uniform(k_b0, (H,), jnp.float32,
                                     -1.0 / math.sqrt(R), 1.0 / math.sqrt(R)),
        # lin: Linear(3H, H) -> stored transposed as [3H, H]
        "w_lin": jax.random.uniform(k_wl, (3 * H, H), jnp.float32,
                                    -1.0 / math.sqrt(3 * H), 1.0 / math.sqrt(3 * H)),
        "b_lin": jax.random.uniform(k_bl, (H,), jnp.float32,
                                    -1.0 / math.sqrt(3 * H), 1.0 / math.sqrt(3 * H)),
        # lin_rbf_1: Linear(R, H, bias=False); glorot_orthogonal in PyTorch is
        # approximated with a scaled normal init here (synthetic weights only;
        # forward math is unaffected).
        "w_rbf1": jax.random.normal(k_w1, (R, H), jnp.float32)
                  * math.sqrt(2.0 / (R + H)),
    }
    return params


# ------------------------- pure-JAX reference -----------------------------

def init_forward_ref(x, i, j, rbf, params):
    swish = lambda v: v * jax.nn.sigmoid(v)
    x_emb = jnp.take(params["emb_weight"], x, axis=0)
    rbf0 = swish(rbf @ params["w_rbf0"] + params["b_rbf0"])
    cat = jnp.concatenate([x_emb[i], x_emb[j], rbf0], axis=-1)
    e1 = swish(cat @ params["w_lin"] + params["b_lin"])
    e2 = (rbf @ params["w_rbf1"]) * e1
    return e1, e2


# --------------------------------- main ------------------------------------

if __name__ == "__main__":
    key = jax.random.PRNGKey(0)
    k_params, k_x, k_i, k_j, k_rbf = jax.random.split(key, 5)

    num_radial = 6
    hidden_channels = 32
    num_nodes = 10
    num_edges = 20            # ragged on purpose: exercises padding + multi-tile grid

    params = make_params(k_params, num_radial, hidden_channels)

    x = jax.random.randint(k_x, (num_nodes,), 0, 95, dtype=jnp.int32)
    i_idx = jax.random.randint(k_i, (num_edges,), 0, num_nodes, dtype=jnp.int32)
    j_idx = jax.random.randint(k_j, (num_edges,), 0, num_nodes, dtype=jnp.int32)
    rbf = jax.random.normal(k_rbf, (num_edges, num_radial), jnp.float32)

    # Small edge tile here just to exercise the pipelined multi-step grid +
    # ragged padding; production default is 2048 rows.
    e1, e2 = init_forward_pallas(x, i_idx, j_idx, rbf, params, edge_tile=16)
    jax.block_until_ready((e1, e2))

    # Correctness check against pure-f32 JAX reference (kernel runs a bf16
    # datapath with f32 accumulation -> loosened tolerance).
    e1_ref, e2_ref = init_forward_ref(x, i_idx, j_idx, rbf, params)
    assert jnp.allclose(e1.astype(jnp.float32), e1_ref, atol=5e-2, rtol=5e-2), "e1 mismatch"
    assert jnp.allclose(e2.astype(jnp.float32), e2_ref, atol=5e-2, rtol=5e-2), "e2 mismatch"

    print("KERNEL_OK")
</pallas_src>

<mosaic_0001>
module attributes {stable_mosaic.version = 11 : i64} {
  func.func @_init_edge_kernel(%arg0: i32, %arg1: memref<16x1xi32, #tpu.memory_space<vmem>>, %arg2: memref<16x8xbf16, #tpu.memory_space<vmem>>, %arg3: memref<256x96xbf16, #tpu.memory_space<vmem>>, %arg4: memref<32x32xbf16, #tpu.memory_space<vmem>>, %arg5: memref<1x32xf32, #tpu.memory_space<vmem>>, %arg6: memref<1x32xf32, #tpu.memory_space<vmem>>, %arg7: memref<16x32xbf16, #tpu.memory_space<vmem>>, %arg8: memref<16x32xbf16, #tpu.memory_space<vmem>>) attributes {dimension_semantics = [#tpu.dimension_semantics<parallel>], iteration_bounds = array<i64: 2>, scalar_prefetch = 0 : i64, scratch_operands = 0 : i64, tpu.core_type = #tpu.core_type<tc>, window_params = [{transform_indices = @transform_0, window_bounds = array<i64: 16, 1>}, {transform_indices = @transform_1, window_bounds = array<i64: 16, 8>}, {pipeline_mode = #tpu.pipeline_mode<synchronous>, transform_indices = @transform_2, window_bounds = array<i64: 256, 96>}, {pipeline_mode = #tpu.pipeline_mode<synchronous>, transform_indices = @transform_3, window_bounds = array<i64: 32, 32>}, {pipeline_mode = #tpu.pipeline_mode<synchronous>, transform_indices = @transform_4, window_bounds = array<i64: 1, 32>}, {pipeline_mode = #tpu.pipeline_mode<synchronous>, transform_indices = @transform_5, window_bounds = array<i64: 1, 32>}, {transform_indices = @transform_6, window_bounds = array<i64: 16, 32>}, {transform_indices = @transform_7, window_bounds = array<i64: 16, 32>}]} {
    %c0 = arith.constant 0 : index
    %c0_0 = arith.constant 0 : index
    %0 = vector.load %arg1[%c0, %c0_0] : memref<16x1xi32, #tpu.memory_space<vmem>>, vector<16x1xi32>
    %c255_i32 = arith.constant 255 : i32
    %1 = vector.broadcast %c255_i32 : i32 to vector<16x1xi32>
    %2 = arith.andi %0, %1 : vector<16x1xi32>
    %c8_i32 = arith.constant 8 : i32
    %3 = vector.broadcast %c8_i32 : i32 to vector<16x1xi32>
    %4 = arith.shrsi %0, %3 : vector<16x1xi32>
    %5 = tpu.iota {dimensions = array<i32: 1>} : vector<16x248xi32>
    %6 = vector.broadcast %2 : vector<16x1xi32> to vector<16x248xi32>
    %7 = arith.cmpi eq, %5, %6 : vector<16x248xi32>
    %c124_i32 = arith.constant 124 : i32
    %8 = vector.broadcast %c124_i32 : i32 to vector<16x1xi32>
    %9 = arith.addi %4, %8 : vector<16x1xi32>
    %10 = vector.broadcast %9 : vector<16x1xi32> to vector<16x248xi32>
    %11 = arith.cmpi eq, %5, %10 : vector<16x248xi32>
    %12 = arith.ori %7, %11 : vector<16x248xi1>
    %13 = arith.extui %12 : vector<16x248xi1> to vector<16x248xi32>
    %14 = arith.sitofp %13 : vector<16x248xi32> to vector<16x248xf32>
    %15 = arith.truncf %14 : vector<16x248xf32> to vector<16x248xbf16>
    %c0_1 = arith.constant 0 : index
    %c0_2 = arith.constant 0 : index
    %16 = vector.load %arg2[%c0_1, %c0_2] : memref<16x8xbf16, #tpu.memory_space<vmem>>, vector<16x8xbf16>
    %17 = tpu.concatenate %15, %16 in 1 : vector<16x248xbf16>, vector<16x8xbf16> -> vector<16x256xbf16>
    %c0_3 = arith.constant 0 : index
    %c0_4 = arith.constant 0 : index
    %18 = vector.load %arg3[%c0_3, %c0_4] : memref<256x96xbf16, #tpu.memory_space<vmem>>, vector<256x96xbf16>
    %cst = arith.constant dense<0.000000e+00> : vector<16x96xf32>
    %19 = tpu.matmul %17, %18, %cst {dimension_numbers = #tpu.dot_dimension_numbers<[1], [0], [0], [1], [0, 0, 1, 1], [], []>} : vector<16x256xbf16>, vector<256x96xbf16>, vector<16x96xf32> -> vector<16x96xf32>
    %20 = vector.extract_strided_slice %19 {offsets = [0, 32], sizes = [16, 32], strides = [1, 1]} : vector<16x96xf32> to vector<16x32xf32>
    %c0_5 = arith.constant 0 : index
    %c0_6 = arith.constant 0 : index
    %21 = vector.load %arg5[%c0_5, %c0_6] : memref<1x32xf32, #tpu.memory_space<vmem>>, vector<1x32xf32>
    %22 = vector.broadcast %21 : vector<1x32xf32> to vector<16x32xf32>
    %23 = arith.addf %20, %22 : vector<16x32xf32>
    %24 = arith.truncf %23 : vector<16x32xf32> to vector<16x32xbf16>
    %25 = arith.negf %24 : vector<16x32xbf16>
    %26 = math.exp %25 : vector<16x32xbf16>
    %cst_7 = arith.constant 1.000000e+00 : bf16
    %27 = vector.broadcast %cst_7 : bf16 to vector<16x32xbf16>
    %28 = arith.addf %27, %26 : vector<16x32xbf16>
    %29 = arith.divf %27, %28 : vector<16x32xbf16>
    %30 = arith.extf %29 : vector<16x32xbf16> to vector<16x32xf32>
    %31 = arith.mulf %23, %30 : vector<16x32xf32>
    %32 = vector.extract_strided_slice %19 {offsets = [0, 0], sizes = [16, 32], strides = [1, 1]} : vector<16x96xf32> to vector<16x32xf32>
    %c0_8 = arith.constant 0 : index
    %c0_9 = arith.constant 0 : index
    %33 = vector.load %arg6[%c0_8, %c0_9] : memref<1x32xf32, #tpu.memory_space<vmem>>, vector<1x32xf32>
    %34 = vector.broadcast %33 : vector<1x32xf32> to vector<16x32xf32>
    %35 = arith.addf %32, %34 : vector<16x32xf32>
    %36 = arith.truncf %31 : vector<16x32xf32> to vector<16x32xbf16>
    %c0_10 = arith.constant 0 : index
    %c0_11 = arith.constant 0 : index
    %37 = vector.load %arg4[%c0_10, %c0_11] : memref<32x32xbf16, #tpu.memory_space<vmem>>, vector<32x32xbf16>
    %cst_12 = arith.constant dense<0.000000e+00> : vector<16x32xf32>
    %38 = tpu.matmul %36, %37, %cst_12 {dimension_numbers = #tpu.dot_dimension_numbers<[1], [0], [0], [1], [0, 0, 1, 1], [], []>} : vector<16x32xbf16>, vector<32x32xbf16>, vector<16x32xf32> -> vector<16x32xf32>
    %39 = arith.addf %35, %38 : vector<16x32xf32>
    %40 = arith.truncf %39 : vector<16x32xf32> to vector<16x32xbf16>
    %41 = arith.negf %40 : vector<16x32xbf16>
    %42 = math.exp %41 : vector<16x32xbf16>
    %cst_13 = arith.constant 1.000000e+00 : bf16
    %43 = vector.broadcast %cst_13 : bf16 to vector<16x32xbf16>
    %44 = arith.addf %43, %42 : vector<16x32xbf16>
    %45 = arith.divf %43, %44 : vector<16x32xbf16>
    %46 = arith.extf %45 : vector<16x32xbf16> to vector<16x32xf32>
    %47 = arith.mulf %39, %46 : vector<16x32xf32>
    %48 = vector.extract_strided_slice %19 {offsets = [0, 64], sizes = [16, 32], strides = [1, 1]} : vector<16x96xf32> to vector<16x32xf32>
    %49 = arith.mulf %48, %47 : vector<16x32xf32>
    %50 = arith.truncf %47 : vector<16x32xf32> to vector<16x32xbf16>
    %c0_14 = arith.constant 0 : index
    %c0_15 = arith.constant 0 : index
    %51 = vector.load %arg7[%c0_14, %c0_15] : memref<16x32xbf16, #tpu.memory_space<vmem>>, vector<16x32xbf16>
    tpu.vector_store %arg7[%c0_14, %c0_15], %50 {strides = array<i32>} : memref<16x32xbf16, #tpu.memory_space<vmem>>, vector<16x32xbf16>,
    %52 = arith.truncf %49 : vector<16x32xf32> to vector<16x32xbf16>
    %c0_16 = arith.constant 0 : index
    %c0_17 = arith.constant 0 : index
    %53 = vector.load %arg8[%c0_16, %c0_17] : memref<16x32xbf16, #tpu.memory_space<vmem>>, vector<16x32xbf16>
    tpu.vector_store %arg8[%c0_16, %c0_17], %52 {strides = array<i32>} : memref<16x32xbf16, #tpu.memory_space<vmem>>, vector<16x32xbf16>,
    return
  }
  func.func @transform_0(%arg0: i32) -> (i32, i32) {
    %c0_i32 = arith.constant 0 : i32
    %c0_i32_0 = arith.constant 0 : i32
    return %arg0, %c0_i32 : i32, i32
  }
  func.func @transform_1(%arg0: i32) -> (i32, i32) {
    %c0_i32 = arith.constant 0 : i32
    %c0_i32_0 = arith.constant 0 : i32
    return %arg0, %c0_i32 : i32, i32
  }
  func.func @transform_2(%arg0: i32) -> (i32, i32) {
    %c0_i32 = arith.constant 0 : i32
    %c0_i32_0 = arith.constant 0 : i32
    %c0_i32_1 = arith.constant 0 : i32
    return %c0_i32, %c0_i32_0 : i32, i32
  }
  func.func @transform_3(%arg0: i32) -> (i32, i32) {
    %c0_i32 = arith.constant 0 : i32
    %c0_i32_0 = arith.constant 0 : i32
    %c0_i32_1 = arith.constant 0 : i32
    return %c0_i32, %c0_i32_0 : i32, i32
  }
  func.func @transform_4(%arg0: i32) -> (i32, i32) {
    %c0_i32 = arith.constant 0 : i32
    %c0_i32_0 = arith.constant 0 : i32
    %c0_i32_1 = arith.constant 0 : i32
    return %c0_i32, %c0_i32_0 : i32, i32
  }
  func.func @transform_5(%arg0: i32) -> (i32, i32) {
    %c0_i32 = arith.constant 0 : i32
    %c0_i32_0 = arith.constant 0 : i32
    %c0_i32_1 = arith.constant 0 : i32
    return %c0_i32, %c0_i32_0 : i32, i32
  }
  func.func @transform_6(%arg0: i32) -> (i32, i32) {
    %c0_i32 = arith.constant 0 : i32
    %c0_i32_0 = arith.constant 0 : i32
    return %arg0, %c0_i32 : i32, i32
  }
  func.func @transform_7(%arg0: i32) -> (i32, i32) {
    %c0_i32 = arith.constant 0 : i32
    %c0_i32_0 = arith.constant 0 : i32
    return %arg0, %c0_i32 : i32, i32
  }
}

</mosaic_0001>

<bundles_post_ra>
// kernel: tpu_custom_call.1
= control target key start
LH: loop header
LB: loop body
LE: loop exit
PB: predicated region body
PF: predicated region fallthrough
CT: control target
= control target key end

     0   :  { %13 = vsyncpa [#allocation3], 0  ;;  %s1379_s0 = inlined_call_operand.vmem [shape: s32[32,1], index: 0, kind: input, shape index: {}]   ;;  %s1380_s1 = inlined_call_operand.vmem [shape: bf16[32,8], index: 1, kind: input, shape index: {}]   ;;  %s1381_s2 = inlined_call_operand.vmem [shape: bf16[256,96], index: 2, kind: input, shape index: {}]   ;;  %s1382_s3 = inlined_call_operand.vmem [shape: bf16[32,32], index: 3, kind: input, shape index: {}]   ;;  %s1383_s4 = inlined_call_operand.vmem [shape: f32[1,32], index: 4, kind: input, shape index: {}]   ;;  %s1384_s5 = inlined_call_operand.vmem [shape: f32[1,32], index: 5, kind: input, shape index: {}]   ;;  %s1385_s6 = inlined_call_operand.hbm [shape: bf16[32,32], index: 6, kind: output, shape index: {0}]   ;;  %s1386_s7 = inlined_call_operand.hbm [shape: bf16[32,32], index: 7, kind: output, shape index: {1}]  }
   0x1   :  { %15 = vsyncpa [#allocation3 + $0x1], 0 }
   0x2   :  { %16 = vsyncpa [#allocation5], 0 }
   0x3   :  { %18 = vsyncpa [#allocation5 + $0x1], 0  ;;  %s1147_s24 = smov 0   ;;  %s1149_s25 = smov 0  }
   0x4   :  { %s1151_s26 = smov 0   ;;  %s1153_s27 = smov 0  }
   0x5 LB: > { %s1168_s28 = sadd.s32 4294967295, %s1094_s27   ;;  %s831_s29 = sadd.s32 4294967294, %s1094_s27   ;;  %s1094_s27 = sphi %s1153_s27, %s1396_s27   ;;  %s1090_s26 = sphi %s1151_s26, %s1395_s26   ;;  %s1086_s25 = sphi %s1149_s25, %s1394_s25   ;;  %s1082_s24 = sphi %s1147_s24, %s1393_s24  }
   0x6   : > { %s1172_s30 = sadd.s32 1, %s1094_s27   ;;  %s167_s8 = sadd.s32 1, %s1090_s26 }
   0x7   : > { %s164_s9 = ssub.s32 %s1094_s27, %s1172_s30  ;;  %p177_p0 = scmp.ne.s32.totalorder %s1090_s26, %s1086_s25 }
   0x8   : > { %p165_p1 = scmp.eq.s32.totalorder %s164_s9, 0  ;;  %p178_p2 = scmp.eq.s32.totalorder %s1168_s28, 1 }
   0x9   : > { %p183_p3 = scmp.ne.s32.totalorder %s1086_s25, %s1082_s24  ;;  %p184_p4 = scmp.eq.s32.totalorder %s831_s29, 1 }
   0xa   : > { %s1183_s10 = scalar_select %p165_p1, %s1090_s26, %s167_s8  }
   0xb   : > { %p1185_p5 = por %p178_p2, %p177_p0  ;;  %p1189_p6 = por %p184_p4, %p183_p3 }
   0xc   : > { %p834_p7 = scmp.ge.s32.totalorder %s1094_s27, 1  ;;  %p258_p8 = scmp.lt.s32.totalorder %s1094_s27, 3 }
   0xe   : > { %p259_p9 = pnand %p834_p7, %p258_p8 }
   0xf   : > { %s837_s13 = sshll.u32 (!%p259_p9), %s1168_s28, 1  ;;  %s1099_s29 = smov (!%p259_p9), 32  }
  0x10   : > { %262 = sbr.rel (%p259_p9) target bundleno = 1014 (0x3f6), region = 44  ;;  %p301_p10 = scmp.lt.s32.totalorder (!%p259_p9), %s837_s13, 3 }
  0x11   : > { %s1103_s8 = smov (!%p259_p9), 64   ;;  %s1387_s15 = sshll.u32 (!%p259_p9), %s1168_s28, 7 }
  0x12   : > { %s1293_s18 = scalar_lea.hbm (!%p259_p9), %s1385_s6, %s1387_s15 }
  0x15   : > { %v978_v0 = vld [vmem:[%s1381_s2 + $0x78] sm:$0xff]   ;;  %v1096_v1 = vmov 0   ;;  %s1398_s13 = smov (!%p301_p10, %s837_s13), 3  ;;  %v980_v3 = vld [vmem:[%s1381_s2 + $0x70] sm:$0xff]   ;;  %v982_v5 = vld [vmem:[%s1381_s2 + $0x68] sm:$0xff]   ;;  %v1097_v12 = vmov 0.0   ;;  %v322_v28 = vlaneseq }
  0x16   : > { %975 = vset.pattern.permute.xlu0 %v1096_v1  ;;  %976 = vset.pattern.permute.xlu1 %v1096_v1  ;;  %v979_v2 = vld [vmem:[%s1381_s2 + $0x38] sm:$0xff]   ;;  %v981_v4 = vld [vmem:[%s1381_s2 + $0x30] sm:$0xff]   ;;  %s838_s22 = sshll.u32 %s1398_s13, 3  ;;  %s840_s23 = sshll.u32 %s1398_s13, 2  ;;  %v983_v6 = vld [vmem:[%s1381_s2 + $0x28] sm:$0xff]   ;;  %vm370_vm8 = vcmask 982016  }
  0x17   : > { %889 = vmatprep.subr.bf16.mxu0 %v978_v0  ;;  %s304_s17 = scalar_lea.vmem %s1379_s0, %s838_s22  ;;  %s310_s20 = scalar_lea.vmem %s1380_s1, %s840_s23  ;;  %914 = vmatprep.subr.bf16.mxu1 %v1097_v12  ;;  %v984_v13 = vld [vmem:[%s1381_s2 + $0x60] sm:$0xff]   ;;  %v986_v18 = vld [vmem:[%s1381_s2 + $0x58] sm:$0xff]   ;;  %v988_v21 = vld [vmem:[%s1381_s2 + $0x50] sm:$0xff]   ;;  %v323_v29 = vand.u32 127, %v322_v28  ;;  %v1100_v40 = vmov 1.0|1.0  }
  0x18   : > { %890 = vmatpush3.bf16.msra.mxu0 %v979_v2  ;;  %v316_v7 = vld [vmem:[%s304_s17] sm:$0xff]  ;;  %v317_v8 = vld [vmem:[%s304_s17 + $0x8] sm:$0xff]  ;;  %v987_v20 = vld [vmem:[%s1381_s2 + $0x18] sm:$0xff]   ;;  %s1098_s17 = smov 120   ;;  %vm1101_vm14 = vmmov 0   ;;  %s1102_s13 = smov 96  }
  0x19   : > { %891 = vmatprep.subr.bf16.mxu0 %v980_v3  ;;  %v318_v9 = vand.u32 255, %v316_v7  ;;  %v320_v10 = vshra.s32 %v316_v7, 8  ;;  %v321_v11 = vshra.s32 %v317_v8, 8  ;;  %v319_v15 = vand.u32 255, %v317_v8  ;;  %v985_v16 = vld [vmem:[%s1381_s2 + $0x20] sm:$0xff]   ;;  %v989_v22 = vld [vmem:[%s1381_s2 + $0x10] sm:$0xff]   ;;  %918 = vmatprep.mubr.msk.bf16.mxu1 %vm1101_vm14, %v1097_v12 }
  0x1a   : > { %v977_v19 = vld [vmem:[%s310_s20] sm:$0xff]   ;;  %v990_v23 = vld [vmem:[%s1381_s2 + $0x48] sm:$0xff]   ;;  %v324_v30 = vadd.s32 128, %v323_v29  ;;  %vm596_vm15 = vcmask 261120  }
  0x1b   : > { %326 = vperm.xlu0 %975, %v318_v9   ;;  %v335_v14 = vadd.s32 124, %v320_v10  ;;  %v336_v17 = vadd.s32 124, %v321_v11  ;;  %v864_v24 = vld [vmem:[%s1383_s4] ss:$0 sm:$0xff]  ;;  %v991_v25 = vld [vmem:[%s1381_s2 + $0x8] sm:$0xff]  }
  0x1c   : > { %892 = vmatpush3.bf16.msra.mxu0 %v981_v4  ;;  %v992_v26 = vld [vmem:[%s1381_s2 + $0x40] sm:$0xff]   ;;  %v994_v41 = vld [vmem:[%s1382_s3 + $0x8] sm:$0xff]  }
  0x1d   : > { %893 = vmatprep.subr.bf16.mxu0 %v982_v5  ;;  %338 = vperm.xlu1 %976, %v335_v14   ;;  %v993_v27 = vld [vmem:[%s1381_s2] sm:$0xff]  }
  0x1e   : > { %915 = vmatpush3.bf16.msra.mxu1 %v994_v41  ;;  %v995_v42 = vld [vmem:[%s1382_s3] sm:$0xff]  }
  0x1f   : > { %329 = vperm.xlu0 %975, %v319_v15   ;;  %916 = vmatprep.subr.bf16.mxu1 %v1097_v12  ;;  %v866_v0 = vld [vmem:[%s1384_s5] ss:$0 sm:$0xff] }
  0x20   : > { %894 = vmatpush3.bf16.msra.mxu0 %v983_v6 }
  0x21   : > { %895 = vmatprep.subr.bf16.mxu0 %v984_v13  ;;  %341 = vperm.xlu1 %976, %v336_v17  }
  0x22   : > { %917 = vmatpush3.bf16.msra.mxu1 %v995_v42 }
  0x23   : > { %368 = vrot.lane.b32.xlu0 %v977_v19, %s1098_s17 }
  0x24   : > { %896 = vmatpush3.bf16.msra.mxu0 %v985_v16 }
  0x25   : > { %897 = vmatprep.subr.bf16.mxu0 %v986_v18  ;;  %550 = vrot.lane.b32.xlu1 %v864_v24, %s1099_s29  ;;  %s1276_s29 = sand.u32 1, %s1086_s25  }
  0x26   : > { %s1388_s23 = sshll.u32 %s1276_s29, 3  ;;  %s691_s19 = scalar_lea.sflag [#allocation3], %s1276_s29 }
  0x27   : > { %s292_s9 = scalar_lea.vmem [#allocation2], %s1388_s23 }
  0x28   : > { %898 = vmatpush3.bf16.msra.mxu0 %v987_v20  ;;  %s709_s14 = sshll.u32 %s292_s9, 4  ;;  %s1285_s14 = int_to_ptr.vmem [resolvable:$true] %s709_s14 }
  0x29   : > { %899 = vmatprep.subr.bf16.mxu0 %v988_v21  ;;  %s1004_s20 = scalar_lea.vmem %s1285_s14, 128 }
  0x2a   : > { %p1005_p11 = scmp.ne.s32.totalorder %s1285_s14, %s1004_s20 }
  0x2c   : > { %900 = vmatpush3.bf16.msra.mxu0 %v989_v22  ;;  %p1006_p12 = pnand %p1005_p11, %p1185_p5 }
  0x2d   : > { %901 = vmatprep.subr.bf16.mxu0 %v990_v23 }
  0x2e   : > { %p1007_p13 = pneg %p1006_p12 }
  0x30   : > { %902 = vmatpush3.bf16.msra.mxu0 %v991_v25 }
  0x31   : > { %903 = vmatprep.subr.bf16.mxu0 %v992_v26 }
  0x34   : > { %904 = vmatpush3.bf16.msra.mxu0 %v993_v27 }
  0x96   : > { %v327_v31 = vpop.permute.xlu0 %326 }
  0x97   : > { %vm332_vm0 = vcmp.eq.s32.totalorder %v324_v30, %v327_v31  ;;  %vm331_vm6 = vcmp.eq.s32.totalorder %v323_v29, %v327_v31 }
  0x98   : > { %v339_v32 = vpop.permute.xlu1 %338 }
  0x99   : > { %vm344_vm1 = vcmp.eq.s32.totalorder %v324_v30, %v339_v32  ;;  %vm343_vm9 = vcmp.eq.s32.totalorder %v323_v29, %v339_v32 }
  0x9a   : > { %v330_v33 = vpop.permute.xlu0 %329  ;;  %vm348_vm2 = vmor %vm332_vm0, %vm344_vm1  ;;  %vm673_vm0 = vcmask 257024  }
  0x9b   : > { %vm334_vm4 = vcmp.eq.s32.totalorder %v324_v30, %v330_v33  ;;  %v842_v35 = vsel %vm348_vm2, 1.0, %v1097_v12  ;;  %vm333_vm10 = vcmp.eq.s32.totalorder %v323_v29, %v330_v33  ;;  %vm347_vm12 = vmor %vm331_vm6, %vm343_vm9 }
  0x9c   : > { %v342_v34 = vpop.permute.xlu1 %341 }
  0x9d   : > { %vm346_vm3 = vcmp.eq.s32.totalorder %v324_v30, %v342_v34  ;;  %vm345_vm5 = vcmp.eq.s32.totalorder %v323_v29, %v342_v34 }
  0x9e   : > { %vm350_vm7 = vmor %vm334_vm4, %vm346_vm3  ;;  %v369_v37 = vpop.permute.xlu0 %368 }
  0x9f   : > { %v844_v36 = vsel %vm350_vm7, 1.0, %v1097_v12  ;;  %vm349_vm11 = vmor %vm333_vm10, %vm345_vm5 }
  0xa0   : > { %v360_v38 = vpack.c.bf16 %v844_v36, %v842_v35  ;;  %vm862_vm13 = vmpackc.low %vm349_vm11, %vm347_vm12  ;;  %v551_v47 = vpop.permute.xlu1 %550 }
  0xa2   : > { %v373_v39 = vsel %vm370_vm8, %v360_v38, %v369_v37 }
  0xa3   : > { %535 = vmatprep.mubr.bf16.mxu0 %v373_v39 }
  0xa4   : > { %863 = vmatmul.mubr.msk.bf16.vlgmr.msra.gmra.mxu0 %vm862_vm13, %v1100_v40 }
 0x164   : > { %v905_v43 = vpop.f32.mrf.mxu0 }
 0x166   : > { %v906_v44 = vpop.f32.mrf.mxu0 }
 0x167   : > { %v1264_v46 = vadd.f32 %v906_v44, %v905_v43 }
 0x168   : > { %v908_v45 = vpop.f32.mrf.mxu0 }
 0x169   : > { %v553_v50 = vadd.f32 %v1264_v46, %v551_v47  ;;  %v574_v3 = vadd.f32 %v1264_v46, %v866_v0 }
 0x16a   : > { %v909_v48 = vpop.f32.mrf.mxu0 }
 0x16b   : > { %v1266_v49 = vadd.f32 %v909_v48, %v908_v45 }
 0x16d   : > { %v554_v51 = vadd.f32 %v1266_v49, %v551_v47  ;;  %v575_v4 = vadd.f32 %v1266_v49, %v866_v0 }
 0x16f   : > { %v555_v52 = vpack.c.bf16 %v554_v51, %v553_v50 }
 0x171   : > { %v865_v53 = vmul.bf16 3216621497, %v555_v52 }
 0x173   : > { %996 = vpow.bf16 %v865_v53 }
 0x181   : > { %v997_v54 = vpop.eup %996 }
 0x182   : > { %v560_v55 = vadd.bf16 1065369472, %v997_v54 }
 0x184   : > { %998 = vrcp.bf16 %v560_v55 }
 0x192   : > { %v999_v56 = vpop.eup %998 }
 0x193   : > { %v562_v57 = vmul.bf16 1065369472, %v999_v56 }
 0x195   : > { %v563_v58 = vunpack.c.l.bf16 %v562_v57  ;;  %v564_v59 = vunpack.c.h.bf16 %v562_v57 }
 0x197   : > { %v565_v60 = vmul.f32 %v563_v58, %v553_v50  ;;  %v566_v61 = vmul.f32 %v564_v59, %v554_v51 }
 0x199   : > { %v576_v62 = vpack.c.bf16 %v566_v61, %v565_v60 }
 0x19b   : > { %582 = vrot.lane.b32.xlu0 %v576_v62, %s1102_s13  ;;  %s1104_s13 = smov [#allocation2]  }
 0x19c   : > { %s1008_s21 = sshll.u32 %s1104_s13, 4  ;;  %s1009_s21 = int_to_ptr.vmem [resolvable:$false] %s1008_s21 }
 0x19d   : > { %s1010_s22 = scalar_lea.vmem %s1009_s21, 256  ;;  %p1011_p0 = scmp.lt.s32.totalorder %s1285_s14, %s1009_s21 }
 0x19e   : > { %p1012_p1 = scmp.lt.s32.totalorder %s1010_s22, %s1004_s20 }
 0x1a0   : > { %p1013_p2 = por %p1012_p1, %p1011_p0 }
 0x1a2   : > { %p1014_p3 = pnand %p1013_p2, %p1007_p13 }
 0x20d   : > { %v583_v63 = vpop.permute.xlu0 %582 }
 0x20e   : > { %919 = vmatmul.mubr.msk.bf16.vlgmr.msra.gmra.mxu1 %vm596_vm15, %v583_v63 }
 0x2ce   : > { %v634_v1 = vpop.f32.mrf.mxu1 }
 0x2cf   : > { %v641_v6 = vadd.f32 %v634_v1, %v574_v3 }
 0x2d0   : > { %v920_v2 = vpop.f32.mrf.mxu1 }
 0x2d2   : > { %v637_v5 = vpop.f32.mrf.mxu1 }
 0x2d3   : > { %v642_v7 = vadd.f32 %v637_v5, %v575_v4 }
 0x2d4   : > { %v921_v8 = vpop.f32.mrf.mxu1 }
 0x2d5   : > { %v643_v9 = vpack.c.bf16 %v642_v7, %v641_v6 }
 0x2d7   : > { %v870_v10 = vmul.bf16 3216621497, %v643_v9 }
 0x2d9   : > { %1000 = vpow.bf16 %v870_v10 }
 0x2e7   : > { %v1001_v11 = vpop.eup %1000 }
 0x2e8   : > { %v648_v12 = vadd.bf16 1065369472, %v1001_v11 }
 0x2ea   : > { %1002 = vrcp.bf16 %v648_v12 }
 0x2f8   : > { %v1003_v13 = vpop.eup %1002 }
 0x2f9   : > { %v650_v14 = vmul.bf16 1065369472, %v1003_v13 }
 0x2fb   : > { %v652_v15 = vunpack.c.h.bf16 %v650_v14  ;;  %v651_v16 = vunpack.c.l.bf16 %v650_v14 }
 0x2fd   : > { %v654_v17 = vmul.f32 %v652_v15, %v642_v7  ;;  %v653_v18 = vmul.f32 %v651_v16, %v641_v6 }
 0x2ff   : > { %v884_v19 = vpack.c.bf16 %v654_v17, %v654_v17  ;;  %659 = vrot.lane.b32.xlu0 %v654_v17, %s1103_s8  ;;  %657 = vrot.lane.b32.xlu1 %v653_v18, %s1103_s8  ;;  %v883_v20 = vpack.c.bf16 %v653_v18, %v653_v18 }
 0x301   : > { %674 = vst.msk [vmem:[%s292_s9] sm:$0xf] %vm673_vm0, %v883_v20  ;;  %675 = vst.msk [vmem:[%s292_s9 + $0x4] sm:$0xf] %vm673_vm0, %v884_v19 }
 0x302   : > { %1017 = shalt.err (!%p1014_p3)
}
 0x303   : > { %s1018_s9 = scalar_lea.hbm %s1293_s18, 128  ;;  %s1022_s13 = scalar_lea.hbm %s1385_s6, 256 }
 0x304   : > { %p1019_p4 = scmp.ne.s32.totalorder %s1293_s18, %s1018_s9  ;;  %p1023_p9 = scmp.lt.s32.totalorder %s1293_s18, %s1385_s6 }
 0x305   : > { %p1024_p10 = scmp.lt.s32.totalorder %s1022_s13, %s1018_s9 }
 0x306   : > { %p1020_p7 = pnand %p1019_p4, %p1185_p5 }
 0x307   : > { %p1025_p11 = por %p1024_p10, %p1023_p9 }
 0x308   : > { %p1021_p8 = pneg %p1020_p7 }
 0x30a   : > { %p1026_p12 = pnand %p1025_p11, %p1021_p8 }
 0x30c   : > { %1029 = shalt.err (!%p1026_p12)
}
 0x30d   : > { %s1105_s20 = smov 4   ;;  %s1391_s23 = sshll.u32 %s1276_s29, 3 }
 0x30e   : > { %922 = dma.vmem_to_hbm [thread:$0]  (%p1185_p5), %s1285_s14, 128, %s1293_s18, %s691_s19, %s1103_s8, %s1103_s8, %s1105_s20  }
 0x30f   : > { %s299_s15 = scalar_lea.vmem [#allocation4], %s1391_s23  ;;  %s1392_s14 = sshll.u32 %s1168_s28, 7 }
 0x310   : > { %s725_s21 = sshll.u32 %s299_s15, 4  ;;  %s1334_s22 = scalar_lea.hbm %s1386_s7, %s1392_s14  ;;  %s1327_s21 = int_to_ptr.vmem [resolvable:$true] %s725_s21 }
 0x311   : > { %s696_s9 = scalar_lea.sflag [#allocation5], %s1276_s29  ;;  %s1030_s16 = scalar_lea.vmem %s1327_s21, 128 }
 0x312   : > { %p1031_p13 = scmp.ne.s32.totalorder %s1327_s21, %s1030_s16  ;;  %s1106_s28 = smov [#allocation4]  }
 0x313   : > { %s1034_s17 = sshll.u32 %s1106_s28, 4  ;;  %s1035_s17 = int_to_ptr.vmem [resolvable:$false] %s1034_s17 }
 0x314   : > { %p1032_p0 = pnand %p1031_p13, %p1185_p5  ;;  %s1036_s13 = scalar_lea.vmem %s1035_s17, 256 }
 0x315   : > { %p1037_p2 = scmp.lt.s32.totalorder %s1327_s21, %s1035_s17  ;;  %p1038_p3 = scmp.lt.s32.totalorder %s1036_s13, %s1030_s16 }
 0x316   : > { %p1033_p1 = pneg %p1032_p0 }
 0x317   : > { %p1039_p4 = por %p1038_p3, %p1037_p2 }
 0x319   : > { %p1040_p7 = pnand %p1039_p4, %p1033_p1 }
 0x371   : > { %v660_v21 = vpop.permute.xlu0 %659  ;;  %v658_v22 = vpop.permute.xlu1 %657 }
 0x372   : > { %v664_v23 = vmul.f32 %v1266_v49, %v660_v21  ;;  %v663_v24 = vmul.f32 %v1264_v46, %v658_v22 }
 0x374   : > { %v886_v25 = vpack.c.bf16 %v664_v23, %v664_v23  ;;  %v885_v26 = vpack.c.bf16 %v663_v24, %v663_v24 }
 0x376   : > { %684 = vrot.lane.b32.xlu0 %v886_v25, %s1103_s8  ;;  %682 = vrot.lane.b32.xlu1 %v885_v26, %s1103_s8 }
 0x3e8   : > { %v685_v27 = vpop.permute.xlu0 %684  ;;  %v683_v28 = vpop.permute.xlu1 %682 }
 0x3e9   : > { %689 = vst.msk [vmem:[%s299_s15 + $0x4] sm:$0xf] %vm673_vm0, %v685_v27  ;;  %688 = vst.msk [vmem:[%s299_s15] sm:$0xf] %vm673_vm0, %v683_v28 }
 0x3ea   : > { %1043 = shalt.err (!%p1040_p7)
}
 0x3eb   : > { %s1044_s23 = scalar_lea.hbm %s1334_s22, 128  ;;  %s1048_s14 = scalar_lea.hbm %s1386_s7, 256 }
 0x3ec   : > { %p1045_p8 = scmp.ne.s32.totalorder %s1334_s22, %s1044_s23  ;;  %p1049_p11 = scmp.lt.s32.totalorder %s1334_s22, %s1386_s7 }
 0x3ed   : > { %p1050_p12 = scmp.lt.s32.totalorder %s1048_s14, %s1044_s23 }
 0x3ee   : > { %p1046_p9 = pnand %p1045_p8, %p1185_p5 }
 0x3ef   : > { %p1051_p13 = por %p1050_p12, %p1049_p11 }
 0x3f0   : > { %p1047_p10 = pneg %p1046_p9 }
 0x3f2   : > { %p1052_p0 = pnand %p1051_p13, %p1047_p10 }
 0x3f4   : > { %1055 = shalt.err (!%p1052_p0)
}
 0x3f5   : > { %923 = dma.vmem_to_hbm [thread:$0]  (%p1185_p5), %s1327_s21, 128, %s1334_s22, %s696_s9, %s1103_s8, %s1103_s8, %s1105_s20  }
 0x3f6 PF: > { %p933_p1 = scmp.ge.s32.totalorder %s1094_s27, 2  ;;  %s740_s16 = sand.u32 1, %s1082_s24  }
 0x3f7   : > { %s741_s28 = scalar_lea.sflag [#allocation3], %s740_s16 }
 0x3f8   : > { %p927_p2 = pnand %p933_p1, %p1189_p6 }
 0x3fa   : > { %p928_p3 = pneg %p927_p2 }
 0x3fc   : > { %1073 = dma.done.wait (%p928_p3), %s741_s28, 128  }
 0x3fd   : > { %1075 = vsyncadd (%p928_p3), %s741_s28, 4294967168  ;;  %s750_s17 = scalar_lea.sflag [#allocation5], %s740_s16 }
 0x3fe   : > { %1077 = dma.done.wait (%p928_p3), %s750_s17, 128  }
 0x3ff   : > { %1079 = vsyncadd (%p928_p3), %s750_s17, 4294967168  ;;  %p21_p5 = scmp.ge.s32.totalorder %s1172_s30, 4   ;;  %s1393_s24 = smov %s1086_s25 }
 0x400   : > { %s1394_s25 = smov %s1090_s26  ;;  %s1395_s26 = smov %s1183_s10 }
 0x401   : > { %s1396_s27 = smov %s1172_s30  ;;  %23 = sbr.rel (!%p21_p5) target bundleno = 5 (0x5), region = 99 }
 0x406   :  { %755 = vsyncpa [#allocation3], 1 }
 0x407   :  { %757 = vsyncpa [#allocation3 + $0x1], 1 }
 0x408   :  { %758 = vsyncpa [#allocation5], 1 }
 0x409   :  { %760 = vsyncpa [#allocation5 + $0x1], 1 }

</bundles_post_ra>
